<compile_context>
chip_gen: v5e
topology: v5e:2x2
jax: 0.10.0
libtpu: 0.0.40
codegen_flags: <defaults>
</compile_context>

<pallas_src>
import functools
import math

import jax
import jax.numpy as jnp
from jax.experimental import pallas as pl
from jax.experimental.pallas import tpu as pltpu

_LANE = 128


def make_positional_encoding(d_model: int, pe_tau: float, max_seq_len: int = 5000,
                             dtype=jnp.float32):
    """Build the `pe` buffer exactly like the torch __init__ (once, in `dtype`)."""
    position = jnp.arange(0, max_seq_len, dtype=jnp.float32)[:, None]        # [L, 1]
    # NOTE: faithfully matches the torch code: -(exp(+...)), not exp(-...).
    # TODO(synk): angles grow like pos*tau^(2i/d); f32 sin/cos of such large
    # arguments is low precision — inherited from the original module.
    divisor = -jnp.exp(
        jnp.arange(0, d_model, 2, dtype=jnp.float32) * math.log(pe_tau) / d_model
    )                                                                         # [D/2]
    angles = position * divisor                                               # [L, D/2]
    pe = jnp.zeros((max_seq_len, d_model), dtype=jnp.float32)
    pe = pe.at[:, 0::2].set(jnp.sin(angles))
    pe = pe.at[:, 1::2].set(jnp.cos(angles))
    return pe[:, None, :].astype(dtype)                                       # [L, 1, D]


# --------------------------------------------------------------------------- kernels

def _pe_add_kernel_3d(x_ref, pe_ref, o_ref):
    # x_ref/o_ref: (ts, B, D); pe_ref: (ts, 1, D).
    # Broadcast over the batch (sublane) axis: near-free sublane-stride read,
    # no extra VMEM tile materialized, vst slot sees only the real output.
    o_ref[...] = x_ref[...] + pe_ref[...]


def _pe_add_kernel_2d(x_ref, pe_ref, o_ref, *, batch: int):
    # Fallback for D % 128 != 0 (tiny feature dims): lane-dense (ts, B*D) slab.
    pe_tile = pe_ref[...]
    if batch > 1:
        # Repeat pe along the flattened (batch*feature) lane axis so column
        # b*D + d picks pe[:, d].  Only used for non-lane-aligned toy shapes.
        pe_tile = jnp.concatenate([pe_tile] * batch, axis=-1)
    o_ref[...] = x_ref[...] + pe_tile


# --------------------------------------------------------------------------- helpers

def _round_up(x: int, m: int) -> int:
    return ((x + m - 1) // m) * m


def _sublane(itemsize: int) -> int:
    # Sublane packing per dtype width: f32 -> 8, bf16 -> 16, int8/fp8 -> 32.
    return max(8, 32 // max(1, itemsize))


def _default_target_bytes() -> int:
    """Per-generation x-tile target (trace-time query, safe fallback)."""
    try:
        info = pltpu.get_tpu_info()
        vmem = int(getattr(info, "vmem_capacity_bytes", 128 << 20))
    except Exception:  # pragma: no cover - defensive, keep the kernel runnable
        vmem = 128 << 20
    # v7x: only 64 MiB VMEM/TC but ~3.2 TB/s HBM -> larger tiles to amortize
    # the ~0.35 us per-step overhead.  v5e/v6e (128 MiB VMEM): 4 MiB is already
    # past the measured roofline knee for streaming f32 adds.
    return (6 << 20) if vmem <= (64 << 20) else (4 << 20)


def _choose_block_rows(n_rows: int, row_bytes: int, sublane: int,
                       target_bytes: int) -> int:
    """Sublane-aligned seq tile: >= 2 grid steps when possible (one per v7x TC),
    capped at ~target_bytes per x tile."""
    if n_rows < 2 * sublane:
        return n_rows                                   # too small to split
    total = n_rows * row_bytes
    tgt = min(target_bytes, max(sublane * row_bytes, total // 2))
    ts = max(sublane, tgt // row_bytes)
    ts = (ts // sublane) * sublane
    if ts >= n_rows:                                    # force at least 2 blocks
        ts = max(sublane, ((n_rows // 2) // sublane) * sublane)
    return min(ts, n_rows)


# --------------------------------------------------------------------------- forward

def positional_encoding_forward(x, pe, *, block_rows=None, target_bytes=None):
    """x: [S, B, D]; pe: [max_seq_len, 1, D]  ->  x + pe[:S] (broadcast over B)."""
    S, B, D = x.shape
    L = pe.shape[0]
    itemsize = jnp.dtype(x.dtype).itemsize
    sub = _sublane(itemsize)
    if target_bytes is None:
        target_bytes = _default_target_bytes()

    if pe.dtype != x.dtype:
        # Per-call fallback only; prefer make_positional_encoding(dtype=x.dtype)
        # so the cast happens once at init, not in the hot path.
        pe = pe.astype(x.dtype)

    row_bytes = B * D * itemsize
    ts = block_rows if block_rows is not None else _choose_block_rows(
        S, row_bytes, sub, target_bytes)
    ts = min(int(ts), S)
    if ts < S:
        ts = max(sub, (ts // sub) * sub)                # dtype-aware sublane align
    grid = (pl.cdiv(S, ts),)

    cost = pl.CostEstimate(
        flops=S * B * D,
        transcendentals=0,
        bytes_accessed=(2 * S * B * D + S * D) * itemsize,
    )
    d_pad = _round_up(D, _LANE)

    if D % _LANE == 0:
        # ---- 3-D broadcast path (realistic, lane-aligned feature dim) ----
        x_tile = ts * _round_up(B, sub) * d_pad * itemsize      # padded VMEM tile
        pe_tile = ts * sub * d_pad * itemsize
        vmem_limit = max(min(2 * (2 * x_tile + pe_tile) + (4 << 20), 64 << 20),
                         16 << 20)
        return pl.pallas_call(
            _pe_add_kernel_3d,
            out_shape=jax.ShapeDtypeStruct((S, B, D), x.dtype),
            grid_spec=pltpu.PrefetchScalarGridSpec(
                num_scalar_prefetch=0,
                grid=grid,
                in_specs=[
                    pl.BlockSpec((ts, B, D), lambda i: (i, 0, 0)),   # x tile
                    pl.BlockSpec((ts, 1, D), lambda i: (i, 0, 0)),   # pe tile (full buffer,
                                                                     # index_map limits rows)
                ],
                out_specs=pl.BlockSpec((ts, B, D), lambda i: (i, 0, 0)),
            ),
            compiler_params=pltpu.CompilerParams(
                dimension_semantics=("parallel",),
                vmem_limit_bytes=int(vmem_limit),
            ),
            cost_estimate=cost,
        )(x, pe)

    # ---- fallback: lane-dense 2-D slab for non-lane-aligned feature dims ----
    W = B * D
    x2 = x.reshape(S, W)
    pe2 = pe.reshape(L, D)                              # squeeze batch dim (cheap)

    ts_pad = _round_up(ts, sub)
    w_pad = _round_up(W, _LANE)
    x_tile = ts_pad * w_pad * itemsize
    pe_tile = ts_pad * d_pad * itemsize
    concat_tmp = x_tile if B > 1 else 0                 # in-kernel repeated pe tile
    vmem_limit = max(min(2 * (2 * x_tile + pe_tile) + concat_tmp + (4 << 20),
                         64 << 20), 16 << 20)

    out2 = pl.pallas_call(
        functools.partial(_pe_add_kernel_2d, batch=B),
        out_shape=jax.ShapeDtypeStruct((S, W), x.dtype),
        grid_spec=pltpu.PrefetchScalarGridSpec(
            num_scalar_prefetch=0,
            grid=grid,
            in_specs=[
                pl.BlockSpec((ts, W), lambda i: (i, 0)),            # x tile
                pl.BlockSpec((ts, D), lambda i: (i, 0)),            # pe tile
            ],
            out_specs=pl.BlockSpec((ts, W), lambda i: (i, 0)),
        ),
        compiler_params=pltpu.CompilerParams(
            dimension_semantics=("parallel",),
            vmem_limit_bytes=int(vmem_limit),
        ),
        cost_estimate=cost,
    )(x2, pe2)
    return out2.reshape(S, B, D)


def _reference(x, pe):
    return x + pe[: x.shape[0], :, :]


if __name__ == "__main__":
    pe_tau = 10000.0
    max_seq_len = 64

    # Case 1: module-consistent toy shape (d_model=32 -> 2-D slab path).
    d_model = 32
    pe = make_positional_encoding(d_model, pe_tau, max_seq_len)
    x = jax.random.normal(jax.random.PRNGKey(0), (8, 2, d_model), dtype=jnp.float32)
    out = jax.block_until_ready(positional_encoding_forward(x, pe))
    assert out.shape == (8, 2, d_model)
    assert jnp.allclose(out, _reference(x, pe), atol=1e-6, rtol=1e-6)

    # Case 2: forced multi-block grid with a remainder tile (2-D path).
    x2 = jax.random.normal(jax.random.PRNGKey(1), (40, 3, d_model), dtype=jnp.float32)
    out2 = jax.block_until_ready(positional_encoding_forward(x2, pe, block_rows=16))
    assert out2.shape == (40, 3, d_model)
    assert jnp.allclose(out2, _reference(x2, pe), atol=1e-6, rtol=1e-6)

    # Case 3: lane-aligned d_model -> 3-D batch-broadcast path (no concat),
    # automatic tiling (multi-block).
    d_model3 = 128
    pe3 = make_positional_encoding(d_model3, pe_tau, max_seq_len)
    x3 = jax.random.normal(jax.random.PRNGKey(2), (24, 4, d_model3), dtype=jnp.float32)
    out3 = jax.block_until_ready(positional_encoding_forward(x3, pe3))
    assert out3.shape == (24, 4, d_model3)
    assert jnp.allclose(out3, _reference(x3, pe3), atol=1e-6, rtol=1e-6)

    print("KERNEL_OK")
</pallas_src>

<mosaic_0001>
module attributes {stable_mosaic.version = 11 : i64} {
  func.func @_pe_add_kernel_2d(%arg0: i32, %arg1: memref<8x64xf32, #tpu.memory_space<vmem>>, %arg2: memref<8x32xf32, #tpu.memory_space<vmem>>, %arg3: memref<8x64xf32, #tpu.memory_space<vmem>>) attributes {dimension_semantics = [#tpu.dimension_semantics<parallel>], iteration_bounds = array<i64: 1>, scalar_prefetch = 0 : i64, scratch_operands = 0 : i64, tpu.core_type = #tpu.core_type<tc>, window_params = [{transform_indices = @transform_0, window_bounds = array<i64: 8, 64>}, {transform_indices = @transform_1, window_bounds = array<i64: 8, 32>}, {transform_indices = @transform_2, window_bounds = array<i64: 8, 64>}]} {
    %c0 = arith.constant 0 : index
    %c0_0 = arith.constant 0 : index
    %0 = vector.load %arg2[%c0, %c0_0] : memref<8x32xf32, #tpu.memory_space<vmem>>, vector<8x32xf32>
    %1 = tpu.concatenate %0, %0 in 1 : vector<8x32xf32>, vector<8x32xf32> -> vector<8x64xf32>
    %c0_1 = arith.constant 0 : index
    %c0_2 = arith.constant 0 : index
    %2 = vector.load %arg1[%c0_1, %c0_2] : memref<8x64xf32, #tpu.memory_space<vmem>>, vector<8x64xf32>
    %3 = arith.addf %2, %1 : vector<8x64xf32>
    %c0_3 = arith.constant 0 : index
    %c0_4 = arith.constant 0 : index
    %4 = vector.load %arg3[%c0_3, %c0_4] : memref<8x64xf32, #tpu.memory_space<vmem>>, vector<8x64xf32>
    tpu.vector_store %arg3[%c0_3, %c0_4], %3 {strides = array<i32>} : memref<8x64xf32, #tpu.memory_space<vmem>>, vector<8x64xf32>,
    return
  }
  func.func @transform_0(%arg0: i32) -> (i32, i32) {
    %c0_i32 = arith.constant 0 : i32
    %c0_i32_0 = arith.constant 0 : i32
    return %arg0, %c0_i32 : i32, i32
  }
  func.func @transform_1(%arg0: i32) -> (i32, i32) {
    %c0_i32 = arith.constant 0 : i32
    %c0_i32_0 = arith.constant 0 : i32
    return %arg0, %c0_i32 : i32, i32
  }
  func.func @transform_2(%arg0: i32) -> (i32, i32) {
    %c0_i32 = arith.constant 0 : i32
    %c0_i32_0 = arith.constant 0 : i32
    return %arg0, %c0_i32 : i32, i32
  }
}

</mosaic_0001>

<bundles_post_ra>
// kernel: tpu_custom_call.1
= control target key start
LH: loop header
LB: loop body
LE: loop exit
PB: predicated region body
PF: predicated region fallthrough
CT: control target
= control target key end

     0   :  { %s93_s0 = inlined_call_operand.vmem [shape: f32[8,64], index: 0, kind: input, shape index: {}]   ;;  %s94_s1 = inlined_call_operand.vmem [shape: f32[64,32], index: 1, kind: input, shape index: {}]   ;;  %s95_s2 = inlined_call_operand.hbm [shape: f32[8,64], index: 2, kind: output, shape index: {}]  }
   0x1   :  { %v12_v0 = vld [vmem:[%s94_s1] sm:$0xff] }
   0x2   :  { %7 = vsyncpa [#allocation3], 0  ;;  %s67_s11 = smov 32   ;;  %vm17_vm0 = vcmask 261120   ;;  %v19_v1 = vld [vmem:[%s93_s0] sm:$0xff]  ;;  %s68_s14 = smov [#allocation2]  }
   0x3   :  { %14 = vrot.lane.b32.xlu0 %v12_v0, %s67_s11  ;;  %s28_s15 = sshll.u32 %s68_s14, 4  ;;  %s30_s18 = sshll.u32 %s95_s2, 4  ;;  %vm21_vm1 = vcmask 523264   ;;  %s29_s15 = int_to_ptr.vmem [resolvable:$true] %s28_s15  ;;  %s31_s18 = int_to_ptr.hbm [resolvable:$true] %s30_s18 }
  0x75   :  { %v15_v2 = vpop.permute.xlu0 %14 }
  0x76   :  { %v18_v3 = vsel %vm17_vm0, %v12_v0, %v15_v2 }
  0x77   :  { %v20_v4 = vadd.f32 %v19_v1, %v18_v3 }
  0x79   :  { %22 = vst.msk [vmem:[#allocation2] sm:$0xff] %vm21_vm1, %v20_v4 }
  0x7a   :  { %33 = dma.vmem_to_hbm [thread:$0]  %s29_s15, 128, %s31_s18, [#allocation3]  }
  0x7b   :  { %65 = dma.done.wait [#allocation3], 128  }
  0x7c   :  { %66 = vsyncadd [#allocation3], 4294967168 }
  0x7d   :  { %38 = vsyncpa [#allocation3], 1 }

</bundles_post_ra>
